<compile_context>
chip_gen: v6e
topology: v6e:2x2x1
jax: 0.10.0
libtpu: 0.0.40
codegen_flags: <defaults>
</compile_context>

<pallas_src>
import functools

import jax
import jax.numpy as jnp
from jax.experimental import pallas as pl
from jax.experimental.pallas import tpu as pltpu

_HIDDEN = 128            # fc1 output width (fixed by the module)
_LANE = 128              # TPU lane width
_SUBLANE = 8             # f32 sublane granularity
_NEG_BIG = -1e30         # finite "minus infinity" for padded logits
_VMEM_BUDGET = 12 * 1024 * 1024   # keeps tiles under v5e's 16 MiB default


def _round_up(x, m):
    return ((x + m - 1) // m) * m


def _pgo_kernel(x_ref, w1_ref, b1_ref, w2_ref, b2_ref, out_ref):
    # fc1: bf16 MXU inputs, f32 accumulation; bias add + ReLU in f32.
    x = x_ref[...]
    if x.dtype != jnp.bfloat16:
        x = x.astype(jnp.bfloat16)
    h = jnp.dot(x, w1_ref[...], preferred_element_type=jnp.float32) + b1_ref[...]
    h = jnp.maximum(h, 0.0)

    # fc2: w2/b2 are lane-padded to 128; padded w2 columns are zero and the
    # matching b2 entries are -1e30, so padded logits are -1e30 (b2 stays f32).
    logits = jnp.dot(h.astype(jnp.bfloat16), w2_ref[...],
                     preferred_element_type=jnp.float32) + b2_ref[...]

    # numerically-stable softmax over the full 128-lane vreg; padded lanes
    # exp() to exactly 0 so the denominator only counts real actions.
    m = jnp.max(logits, axis=-1, keepdims=True)
    e = jnp.exp(logits - m)
    denom = jnp.sum(e, axis=-1, keepdims=True)

    # store only the real action lanes (masked vst; saves ~128/action_dim of
    # the HBM write traffic vs. a padded store).
    n_act = out_ref.shape[-1]
    out_ref[...] = (e[:, :n_act] / denom).astype(out_ref.dtype)


@functools.partial(jax.jit, static_argnames=("block_b",))
def discrete_pgo_forward(x, w1, b1, w2, b2, *, block_b=2048):
    """Pallas forward of DiscretePGO: softmax(fc2(relu(fc1(x))), dim=-1).

    x  : (B, state_dim)  float32 or bfloat16
    w1 : (state_dim, 128), b1 : (1, 128)      (transposed vs. nn.Linear)
    w2 : (128, action_dim), b2 : (1, action_dim)
    returns (B, action_dim) float32 probabilities.
    """
    B, state_dim = x.shape
    hidden, action_dim = w2.shape
    act_pad = _round_up(max(action_dim, 1), _LANE)

    # Batch tile: aim for >= 2 grid steps (v7x megacore), multiple of 8
    # sublanes, capped by block_b and by a v5e-safe VMEM budget.
    x_bytes = jnp.dtype(x.dtype).itemsize
    tb = min(block_b, _round_up(max(pl.cdiv(B, 2), 1), _SUBLANE))
    per_row = (2 * state_dim * x_bytes          # double-buffered x tile
               + 4 * _HIDDEN * 4                # h / logits / e / probs temps
               + 2 * act_pad * 4)               # layout-copy slack
    tb_cap = max(_SUBLANE, (_VMEM_BUDGET // per_row) // _SUBLANE * _SUBLANE)
    tb = max(_SUBLANE, min(tb, tb_cap))

    # Lane-pad fc2 params; matmul weights pre-cast to bf16 (halves their DMA,
    # accumulation is f32 on the MXU).  Biases stay f32.
    w2p = jnp.pad(w2, ((0, 0), (0, act_pad - action_dim)))
    b2p = jnp.pad(b2, ((0, 0), (0, act_pad - action_dim)),
                  constant_values=_NEG_BIG)
    w1_bf = w1.astype(jnp.bfloat16)
    w2_bf = w2p.astype(jnp.bfloat16)

    grid = (pl.cdiv(B, tb),)   # partial last block: OOB reads are per-row
                               # garbage (rows independent), OOB writes masked.
    return pl.pallas_call(
        _pgo_kernel,
        out_shape=jax.ShapeDtypeStruct((B, action_dim), jnp.float32),
        grid=grid,
        in_specs=[
            pl.BlockSpec((tb, state_dim), lambda i: (i, 0)),      # x tile
            pl.BlockSpec((state_dim, hidden), lambda i: (0, 0)),  # w1 resident
            pl.BlockSpec((1, hidden), lambda i: (0, 0)),          # b1 resident
            pl.BlockSpec((hidden, act_pad), lambda i: (0, 0)),    # w2 resident
            pl.BlockSpec((1, act_pad), lambda i: (0, 0)),         # b2 resident
        ],
        out_specs=pl.BlockSpec((tb, action_dim), lambda i: (i, 0)),
        compiler_params=pltpu.CompilerParams(
            dimension_semantics=("parallel",)),
    )(x, w1_bf, b1, w2_bf, b2p)


def init_params(key, state_dim, action_dim, hidden=_HIDDEN):
    """Deterministic init mimicking nn.Linear's U(-1/sqrt(fan_in), 1/sqrt(fan_in))."""
    k1, k2, k3, k4 = jax.random.split(key, 4)
    bound1 = 1.0 / jnp.sqrt(state_dim)
    bound2 = 1.0 / jnp.sqrt(hidden)
    w1 = jax.random.uniform(k1, (state_dim, hidden), jnp.float32, -bound1, bound1)
    b1 = jax.random.uniform(k2, (1, hidden), jnp.float32, -bound1, bound1)
    w2 = jax.random.uniform(k3, (hidden, action_dim), jnp.float32, -bound2, bound2)
    b2 = jax.random.uniform(k4, (1, action_dim), jnp.float32, -bound2, bound2)
    return w1, b1, w2, b2


def _reference(x, w1, b1, w2, b2):
    # Same bf16-input / f32-accumulate matmuls as the kernel, softmax in f32.
    h = jnp.dot(x.astype(jnp.bfloat16), w1.astype(jnp.bfloat16),
                preferred_element_type=jnp.float32) + b1
    h = jnp.maximum(h, 0.0)
    logits = jnp.dot(h.astype(jnp.bfloat16), w2.astype(jnp.bfloat16),
                     preferred_element_type=jnp.float32) + b2
    return jax.nn.softmax(logits, axis=-1)


if __name__ == "__main__":
    key = jax.random.PRNGKey(0)
    k_param, k_x = jax.random.split(key)

    batch, state_dim, action_dim = 8, 32, 4
    w1, b1, w2, b2 = init_params(k_param, state_dim, action_dim)
    x = jax.random.normal(k_x, (batch, state_dim), jnp.float32)

    probs = jax.block_until_ready(discrete_pgo_forward(x, w1, b1, w2, b2))

    assert probs.shape == (batch, action_dim)
    # softmax rows sum to 1 (exact division -> f32-rounding accurate)
    assert jnp.allclose(jnp.sum(probs, axis=-1), 1.0, atol=1e-5)
    # cross-check against a matching bf16-matmul reference
    assert jnp.allclose(probs, _reference(x, w1, b1, w2, b2), atol=1e-4)
    # and a loose check against the full-f32 reference
    ref_f32 = jax.nn.softmax(jnp.maximum(x @ w1 + b1, 0.0) @ w2 + b2, axis=-1)
    assert jnp.allclose(probs, ref_f32, atol=2e-2)

    # exercise the batch-remainder (partial last block) path, grid=(1,)
    x_odd = jax.random.normal(jax.random.PRNGKey(1), (5, state_dim), jnp.float32)
    probs_odd = jax.block_until_ready(discrete_pgo_forward(x_odd, w1, b1, w2, b2))
    assert probs_odd.shape == (5, action_dim)
    assert jnp.allclose(probs_odd, _reference(x_odd, w1, b1, w2, b2), atol=1e-4)

    # exercise a multi-step grid with a partial last block (grid=(2,), tb=24)
    x_big = jax.random.normal(jax.random.PRNGKey(2), (40, state_dim), jnp.float32)
    probs_big = jax.block_until_ready(discrete_pgo_forward(x_big, w1, b1, w2, b2))
    assert probs_big.shape == (40, action_dim)
    assert jnp.allclose(probs_big, _reference(x_big, w1, b1, w2, b2), atol=1e-4)

    print("KERNEL_OK")
</pallas_src>

<mosaic_0001>
module attributes {stable_mosaic.version = 11 : i64} {
  func.func @_pgo_kernel(%arg0: i32, %arg1: memref<8x32xf32, #tpu.memory_space<vmem>>, %arg2: memref<32x128xbf16, #tpu.memory_space<vmem>>, %arg3: memref<1x128xf32, #tpu.memory_space<vmem>>, %arg4: memref<128x128xbf16, #tpu.memory_space<vmem>>, %arg5: memref<1x128xf32, #tpu.memory_space<vmem>>, %arg6: memref<8x4xf32, #tpu.memory_space<vmem>>) attributes {dimension_semantics = [#tpu.dimension_semantics<parallel>], iteration_bounds = array<i64: 1>, scalar_prefetch = 0 : i64, scratch_operands = 0 : i64, tpu.core_type = #tpu.core_type<tc>, window_params = [{transform_indices = @transform_0, window_bounds = array<i64: 8, 32>}, {pipeline_mode = #tpu.pipeline_mode<synchronous>, transform_indices = @transform_1, window_bounds = array<i64: 32, 128>}, {pipeline_mode = #tpu.pipeline_mode<synchronous>, transform_indices = @transform_2, window_bounds = array<i64: 1, 128>}, {pipeline_mode = #tpu.pipeline_mode<synchronous>, transform_indices = @transform_3, window_bounds = array<i64: 128, 128>}, {pipeline_mode = #tpu.pipeline_mode<synchronous>, transform_indices = @transform_4, window_bounds = array<i64: 1, 128>}, {transform_indices = @transform_5, window_bounds = array<i64: 8, 4>}]} {
    %c0 = arith.constant 0 : index
    %c0_0 = arith.constant 0 : index
    %0 = vector.load %arg1[%c0, %c0_0] : memref<8x32xf32, #tpu.memory_space<vmem>>, vector<8x32xf32>
    %1 = arith.truncf %0 : vector<8x32xf32> to vector<8x32xbf16>
    %c0_1 = arith.constant 0 : index
    %c0_2 = arith.constant 0 : index
    %2 = vector.load %arg2[%c0_1, %c0_2] : memref<32x128xbf16, #tpu.memory_space<vmem>>, vector<32x128xbf16>
    %cst = arith.constant dense<0.000000e+00> : vector<8x128xf32>
    %3 = tpu.matmul %1, %2, %cst {dimension_numbers = #tpu.dot_dimension_numbers<[1], [0], [0], [1], [0, 0, 1, 1], [], []>} : vector<8x32xbf16>, vector<32x128xbf16>, vector<8x128xf32> -> vector<8x128xf32>
    %c0_3 = arith.constant 0 : index
    %c0_4 = arith.constant 0 : index
    %4 = vector.load %arg3[%c0_3, %c0_4] : memref<1x128xf32, #tpu.memory_space<vmem>>, vector<1x128xf32>
    %5 = vector.broadcast %4 : vector<1x128xf32> to vector<8x128xf32>
    %6 = arith.addf %3, %5 : vector<8x128xf32>
    %cst_5 = arith.constant 0.000000e+00 : f32
    %7 = vector.broadcast %cst_5 : f32 to vector<8x128xf32>
    %8 = arith.maximumf %6, %7 : vector<8x128xf32>
    %9 = arith.truncf %8 : vector<8x128xf32> to vector<8x128xbf16>
    %c0_6 = arith.constant 0 : index
    %c0_7 = arith.constant 0 : index
    %10 = vector.load %arg4[%c0_6, %c0_7] : memref<128x128xbf16, #tpu.memory_space<vmem>>, vector<128x128xbf16>
    %cst_8 = arith.constant dense<0.000000e+00> : vector<8x128xf32>
    %11 = tpu.matmul %9, %10, %cst_8 {dimension_numbers = #tpu.dot_dimension_numbers<[1], [0], [0], [1], [0, 0, 1, 1], [], []>} : vector<8x128xbf16>, vector<128x128xbf16>, vector<8x128xf32> -> vector<8x128xf32>
    %c0_9 = arith.constant 0 : index
    %c0_10 = arith.constant 0 : index
    %12 = vector.load %arg5[%c0_9, %c0_10] : memref<1x128xf32, #tpu.memory_space<vmem>>, vector<1x128xf32>
    %13 = vector.broadcast %12 : vector<1x128xf32> to vector<8x128xf32>
    %14 = arith.addf %11, %13 : vector<8x128xf32>
    %cst_11 = arith.constant dense<0xFF800000> : vector<8xf32>
    %15 = vector.multi_reduction <maximumf>, %14, %cst_11 [1] : vector<8x128xf32> to vector<8xf32>
    %16 = vector.shape_cast %15 : vector<8xf32> to vector<8x1xf32>
    %17 = vector.broadcast %16 : vector<8x1xf32> to vector<8x128xf32>
    %18 = arith.subf %14, %17 : vector<8x128xf32>
    %19 = math.exp %18 : vector<8x128xf32>
    %cst_12 = arith.constant dense<0.000000e+00> : vector<8xf32>
    %20 = vector.multi_reduction <add>, %19, %cst_12 [1] : vector<8x128xf32> to vector<8xf32>
    %21 = vector.shape_cast %20 : vector<8xf32> to vector<8x1xf32>
    %22 = vector.extract_strided_slice %19 {offsets = [0, 0], sizes = [8, 4], strides = [1, 1]} : vector<8x128xf32> to vector<8x4xf32>
    %23 = vector.broadcast %21 : vector<8x1xf32> to vector<8x4xf32>
    %24 = arith.divf %22, %23 : vector<8x4xf32>
    %c0_13 = arith.constant 0 : index
    %c0_14 = arith.constant 0 : index
    %25 = vector.load %arg6[%c0_13, %c0_14] : memref<8x4xf32, #tpu.memory_space<vmem>>, vector<8x4xf32>
    tpu.vector_store %arg6[%c0_13, %c0_14], %24 {strides = array<i32>} : memref<8x4xf32, #tpu.memory_space<vmem>>, vector<8x4xf32>,
    return
  }
  func.func @transform_0(%arg0: i32) -> (i32, i32) {
    %c0_i32 = arith.constant 0 : i32
    %c0_i32_0 = arith.constant 0 : i32
    return %arg0, %c0_i32 : i32, i32
  }
  func.func @transform_1(%arg0: i32) -> (i32, i32) {
    %c0_i32 = arith.constant 0 : i32
    %c0_i32_0 = arith.constant 0 : i32
    %c0_i32_1 = arith.constant 0 : i32
    return %c0_i32, %c0_i32_0 : i32, i32
  }
  func.func @transform_2(%arg0: i32) -> (i32, i32) {
    %c0_i32 = arith.constant 0 : i32
    %c0_i32_0 = arith.constant 0 : i32
    %c0_i32_1 = arith.constant 0 : i32
    return %c0_i32, %c0_i32_0 : i32, i32
  }
  func.func @transform_3(%arg0: i32) -> (i32, i32) {
    %c0_i32 = arith.constant 0 : i32
    %c0_i32_0 = arith.constant 0 : i32
    %c0_i32_1 = arith.constant 0 : i32
    return %c0_i32, %c0_i32_0 : i32, i32
  }
  func.func @transform_4(%arg0: i32) -> (i32, i32) {
    %c0_i32 = arith.constant 0 : i32
    %c0_i32_0 = arith.constant 0 : i32
    %c0_i32_1 = arith.constant 0 : i32
    return %c0_i32, %c0_i32_0 : i32, i32
  }
  func.func @transform_5(%arg0: i32) -> (i32, i32) {
    %c0_i32 = arith.constant 0 : i32
    %c0_i32_0 = arith.constant 0 : i32
    return %arg0, %c0_i32 : i32, i32
  }
}

</mosaic_0001>

<bundles_post_ra>
// kernel: discrete_pgo_forward.1
= control target key start
LH: loop header
LB: loop body
LE: loop exit
PB: predicated region body
PF: predicated region fallthrough
CT: control target
= control target key end

     0   :  { %v287_v0 = vmov 0.0   ;;  %vm288_vm0 = vmmov 0   ;;  %vm46_vm1 = vcmask 261120   ;;  %vm212_vm2 = vcmask 31744   ;;  %s361_s1 = inlined_call_operand.vmem [shape: bf16[32,128], index: 1, kind: input, shape index: {}]   ;;  %s362_s0 = inlined_call_operand.vmem [shape: f32[8,32], index: 0, kind: input, shape index: {}]   ;;  %s363_s3 = inlined_call_operand.vmem [shape: bf16[128,128], index: 3, kind: input, shape index: {}]   ;;  %s364_s2 = inlined_call_operand.vmem [shape: f32[1,128], index: 2, kind: input, shape index: {}]   ;;  %s365_s4 = inlined_call_operand.vmem [shape: f32[1,128], index: 4, kind: input, shape index: {}]   ;;  %s366_s5 = inlined_call_operand.vmem [shape: f32[8,4], index: 5, kind: output, shape index: {}]  }
   0x1   :  { %243 = vmatprep.subr.bf16.mxu0 %v287_v0  ;;  %v273_v1 = vld [vmem:[%s361_s1 + $0x8] sm:$0xff]   ;;  %247 = vmatprep.mubr.msk.bf16.mxu0 %vm288_vm0, %v287_v0  ;;  %v274_v2 = vld [vmem:[%s361_s1] sm:$0xff]   ;;  %v275_v4 = vld [vmem:[%s363_s3 + $0x38] sm:$0xff]  }
   0x2   :  { %251 = vmatprep.subr.bf16.mxu1 %v287_v0  ;;  %267 = vmatprep.mubr.msk.bf16.mxu1 %vm288_vm0, %v287_v0  ;;  %v21_v3 = vld [vmem:[%s362_s0] sm:$0xff]  ;;  %v276_v6 = vld [vmem:[%s363_s3 + $0x30] sm:$0xff]   ;;  %v277_v7 = vld [vmem:[%s363_s3 + $0x28] sm:$0xff]  }
   0x3   :  { %244 = vmatpush3.bf16.msra.mxu0 %v273_v1  ;;  %v22_v5 = vpack.c.bf16 %v21_v3, %v21_v3  ;;  %252 = vmatpush3.bf16.msra.mxu1 %v275_v4  ;;  %v278_v8 = vld [vmem:[%s363_s3 + $0x20] sm:$0xff]   ;;  %v279_v9 = vld [vmem:[%s363_s3 + $0x18] sm:$0xff]   ;;  %v280_v10 = vld [vmem:[%s363_s3 + $0x10] sm:$0xff]  }
   0x4   :  { %245 = vmatprep.subr.bf16.mxu0 %v287_v0  ;;  %253 = vmatprep.subr.bf16.mxu1 %v287_v0  ;;  %v281_v11 = vld [vmem:[%s363_s3 + $0x8] sm:$0xff]   ;;  %v282_v12 = vld [vmem:[%s363_s3] sm:$0xff]  }
   0x5   :  { %v218_v13 = vld [vmem:[%s364_s2] ss:$0 sm:$0xff] }
   0x6   :  { %v222_v21 = vld [vmem:[%s365_s4] ss:$0 sm:$0xff] }
   0x7   :  { %246 = vmatpush3.bf16.msra.mxu0 %v274_v2  ;;  %254 = vmatpush3.bf16.msra.mxu1 %v276_v6 }
   0x8   :  { %255 = vmatprep.subr.bf16.mxu1 %v287_v0 }
   0xa   :  { %248 = vmatmul.mubr.msk.bf16.vlgmr.msra.gmra.mxu0 %vm46_vm1, %v22_v5 }
   0xb   :  { %256 = vmatpush3.bf16.msra.mxu1 %v277_v7 }
   0xc   :  { %257 = vmatprep.subr.bf16.mxu1 %v287_v0 }
   0xf   :  { %258 = vmatpush3.bf16.msra.mxu1 %v278_v8 }
  0x10   :  { %259 = vmatprep.subr.bf16.mxu1 %v287_v0 }
  0x13   :  { %260 = vmatpush3.bf16.msra.mxu1 %v279_v9 }
  0x14   :  { %261 = vmatprep.subr.bf16.mxu1 %v287_v0 }
  0x17   :  { %262 = vmatpush3.bf16.msra.mxu1 %v280_v10 }
  0x18   :  { %263 = vmatprep.subr.bf16.mxu1 %v287_v0 }
  0x1b   :  { %264 = vmatpush3.bf16.msra.mxu1 %v281_v11 }
  0x1c   :  { %265 = vmatprep.subr.bf16.mxu1 %v287_v0 }
  0x1f   :  { %266 = vmatpush3.bf16.msra.mxu1 %v282_v12 }
  0xca   :  { %v84_v14 = vpop.f32.mrf.mxu0 }
  0xcb   :  { %v85_v15 = vadd.f32 %v218_v13, %v84_v14 }
  0xcc   :  { %v249_v16 = vpop.f32.mrf.mxu0 }
  0xcd   :  { %v90_v17 = vmax.f32 %v85_v15, 0.0 }
  0xce   :  { %v87_v18 = vpop.f32.mrf.mxu0 }
  0xcf   :  { %v91_v19 = vpack.c.bf16 %v90_v17, %v90_v17 }
  0xd0   :  { %v250_v20 = vpop.f32.mrf.mxu0 }
  0xd1   :  { %268 = vmatmul.mubr.bf16.vlgmr.msra.gmra.mxu1 %v91_v19 }
 0x191   :  { %v197_v22 = vpop.f32.mrf.mxu1 }
 0x192   :  { %v198_v23 = vadd.f32 %v222_v21, %v197_v22 }
 0x193   :  { %v269_v24 = vpop.f32.mrf.mxu1 }
 0x194   :  { %203 = vmax.xlane.f32.xlu0 %v198_v23 }
 0x195   :  { %v200_v25 = vpop.f32.mrf.mxu1 }
 0x197   :  { %v270_v26 = vpop.f32.mrf.mxu1 }
 0x21d   :  { %v204_v27 = vpop.xlane.xlu0 %203 }
 0x21e   :  { %v205_v28 = vsub.f32 %v198_v23, %v204_v27 }
 0x220   :  { %v206_v29 = vmul.f32 1.442695, %v205_v28 }
 0x222   :  { %283 = vpow2.f32 %v206_v29 }
 0x22f   :  { %v284_v30 = vpop.eup %283 }
 0x230   :  { %208 = vadd.xlane.f32.xlu0 %v284_v30 }
 0x2b9   :  { %v209_v31 = vpop.xlane.xlu0 %208 }
 0x2ba   :  { %285 = vrcp.f32 %v209_v31 }
 0x2c7   :  { %v286_v32 = vpop.eup %285 }
 0x2c8   :  { %v211_v33 = vmul.f32 %v286_v32, %v284_v30 }
 0x2ca   :  { %213 = vst.msk [vmem:[%s366_s5] sm:$0xff] %vm212_vm2, %v211_v33 }

</bundles_post_ra>
